<compile_context>
chip_gen: v5e
topology: v5e:2x2
jax: 0.10.0
libtpu: 0.0.40
codegen_flags: <defaults>
</compile_context>

<pallas_src>
import jax
import jax.numpy as jnp
from jax.experimental import pallas as pl
from jax.experimental.pallas import tpu as pltpu


def _round_up(x, m):
    return (x + m - 1) // m * m


def _pad2(a, rows, cols):
    return jnp.pad(a, ((0, rows - a.shape[0]), (0, cols - a.shape[1])))


def bert_intermediate_kernel(x_ref, xd_ref, w1_ref, w2_ref, b12_ref,
                             w3_ref, b3_ref, o_ref):
    # Fused input projections: two bf16 MXU contractions, f32 accumulation.
    h = jnp.dot(x_ref[...], w1_ref[...], preferred_element_type=jnp.float32)
    h = h + jnp.dot(xd_ref[...], w2_ref[...], preferred_element_type=jnp.float32)
    # Bias + ReLU in f32, then back to the MXU-native dtype for the 2nd dot.
    h = jnp.maximum(h + b12_ref[...], 0.0).astype(jnp.bfloat16)
    # Output projection (intermediate -> hidden), bias added in f32.
    out = jnp.dot(h, w3_ref[...], preferred_element_type=jnp.float32) + b3_ref[...]
    o_ref[...] = out.astype(o_ref.dtype)


def pack_params(params):
    """One-time packing: pad to lane-dense (multiples of 128), fuse b1+b2,
    cast weights to bf16.  Call once at init, NOT per forward."""
    w1, b1, w2, b2, w3, b3 = params                  # w*: [in, out], b*: [1, out]
    H, I = w1.shape
    Hp, Ip = _round_up(H, 128), _round_up(I, 128)
    w1p = _pad2(w1, Hp, Ip).astype(jnp.bfloat16)     # [Hp, Ip]
    w2p = _pad2(w2, Hp, Ip).astype(jnp.bfloat16)     # [Hp, Ip]
    b12 = _pad2(b1 + b2, 1, Ip)                      # [1, Ip] f32
    w3p = _pad2(w3, Ip, Hp).astype(jnp.bfloat16)     # [Ip, Hp]
    b3p = _pad2(b3, 1, Hp)                           # [1, Hp] f32
    return (w1p, w2p, b12, w3p, b3p, H, I)


def bert_intermediate(x, x_dag, packed, *, tm=256):
    """x, x_dag: [B, S, H] float32.  packed: output of pack_params().
    Returns [B, S, H] float32.  tm: token rows per grid step."""
    w1p, w2p, b12, w3p, b3p, H, I = packed
    B, S, H_in = x.shape
    assert H_in == H, "input hidden size must match packed params"
    M = B * S
    Hp, Ip = w1p.shape
    assert w3p.shape == (Ip, Hp)

    # Row tile: clamp for tiny inputs, and make sure the ("parallel",) grid
    # has >= 2 steps when M allows so both v7x TensorCores get work.
    tm = max(8, min(tm, _round_up(M, 8)))
    if M > 8 and pl.cdiv(M, tm) < 2:
        tm = _round_up(pl.cdiv(M, 2), 8)
    Mp = _round_up(M, tm)
    grid = (Mp // tm,)

    # Activations: pad, cast to bf16 (halves the streamed HBM->VMEM traffic).
    xp = _pad2(x.reshape(M, H), Mp, Hp).astype(jnp.bfloat16)
    xdp = _pad2(x_dag.reshape(M, H), Mp, Hp).astype(jnp.bfloat16)

    resident = pl.Buffered(1)   # constant-index blocks: one VMEM copy, not 2x

    # VMEM budget derived from the actual buffers (+25% headroom), clamped so
    # it stays well inside v7x's 64 MiB per-TC VMEM for BERT-sized layers.
    bytes_w = 2 * (Hp * Ip + Hp * Ip + Ip * Hp)       # bf16 resident weights
    bytes_b = 4 * (Ip + Hp)                           # f32 resident biases
    bytes_in = 2 * (2 * tm * Hp * 2)                  # x, x_dag bf16, dbl-buffered
    bytes_out = 2 * (tm * Hp * 4)                     # f32 out, dbl-buffered
    bytes_h = tm * Ip * (4 + 2)                       # f32 acc + bf16 copy of h
    vmem_limit = int(1.25 * (bytes_w + bytes_b + bytes_in + bytes_out + bytes_h))
    vmem_limit = min(max(vmem_limit + (4 << 20), 16 << 20), 96 << 20)

    flops = 2 * M * H * I * 3                         # three H*I-sized matmuls
    bytes_accessed = (2 * (2 * M * H)                 # bf16 x, x_dag reads
                      + 2 * (3 * H * I)               # bf16 weights (read once)
                      + 4 * (I + H)                   # f32 biases
                      + 4 * (M * H))                  # f32 output write

    out = pl.pallas_call(
        bert_intermediate_kernel,
        out_shape=jax.ShapeDtypeStruct((Mp, Hp), jnp.float32),
        grid_spec=pltpu.PrefetchScalarGridSpec(
            num_scalar_prefetch=0,
            grid=grid,
            in_specs=[
                pl.BlockSpec((tm, Hp), lambda i: (i, 0)),          # x tile
                pl.BlockSpec((tm, Hp), lambda i: (i, 0)),          # x_dag tile
                pl.BlockSpec((Hp, Ip), lambda i: (0, 0),
                             pipeline_mode=resident),              # W1
                pl.BlockSpec((Hp, Ip), lambda i: (0, 0),
                             pipeline_mode=resident),              # W2
                pl.BlockSpec((1, Ip), lambda i: (0, 0),
                             pipeline_mode=resident),              # b1 + b2
                pl.BlockSpec((Ip, Hp), lambda i: (0, 0),
                             pipeline_mode=resident),              # W3
                pl.BlockSpec((1, Hp), lambda i: (0, 0),
                             pipeline_mode=resident),              # b3
            ],
            out_specs=pl.BlockSpec((tm, Hp), lambda i: (i, 0)),
        ),
        compiler_params=pltpu.CompilerParams(
            dimension_semantics=("parallel",),
            vmem_limit_bytes=vmem_limit),
        cost_estimate=pl.CostEstimate(
            flops=flops, transcendentals=0, bytes_accessed=bytes_accessed),
    )(xp, xdp, w1p, w2p, b12, w3p, b3p)

    return out[:M, :H].reshape(B, S, H)


def init_params(key, hidden_size, intermediate_size):
    """Deterministic synthetic params.  PyTorch Linear stores weight as
    (out, in); we store the transpose (in, out) so the kernel matmuls are
    x @ W, matching x @ weight.T of nn.Linear."""
    k1, k2, k3, k4, k5, k6 = jax.random.split(key, 6)
    s = 0.02
    w1 = s * jax.random.normal(k1, (hidden_size, intermediate_size), jnp.float32)
    b1 = s * jax.random.normal(k2, (1, intermediate_size), jnp.float32)
    w2 = s * jax.random.normal(k3, (hidden_size, intermediate_size), jnp.float32)
    b2 = s * jax.random.normal(k4, (1, intermediate_size), jnp.float32)
    w3 = s * jax.random.normal(k5, (intermediate_size, hidden_size), jnp.float32)
    b3 = s * jax.random.normal(k6, (1, hidden_size), jnp.float32)
    return (w1, b1, w2, b2, w3, b3)


def reference(x, x_dag, params):
    w1, b1, w2, b2, w3, b3 = params
    h = jax.nn.relu(x @ w1 + b1 + x_dag @ w2 + b2)
    return h @ w3 + b3


if __name__ == "__main__":
    B, S, H, I = 2, 8, 32, 128   # batch, seq, hidden_size, intermediate_size

    key = jax.random.PRNGKey(0)
    kx, kxd, kp = jax.random.split(key, 3)
    x = jax.random.normal(kx, (B, S, H), jnp.float32)
    x_dag = jax.random.normal(kxd, (B, S, H), jnp.float32)
    params = init_params(kp, H, I)
    packed = pack_params(params)     # one-time weight packing (bf16, padded)

    out = bert_intermediate(x, x_dag, packed)
    out = jax.block_until_ready(out)

    ref = reference(x, x_dag, params)
    assert out.shape == (B, S, H)
    # bf16 matmuls with f32 accumulation: loosen tolerance vs the f32 reference.
    assert jnp.allclose(out, ref, atol=1e-2, rtol=1e-2), "mismatch vs reference"

    print("KERNEL_OK")
</pallas_src>

<mosaic_0001>
module attributes {stable_mosaic.version = 11 : i64} {
  func.func @bert_intermediate_kernel(%arg0: i32, %arg1: memref<8x128xbf16, #tpu.memory_space<vmem>>, %arg2: memref<8x128xbf16, #tpu.memory_space<vmem>>, %arg3: memref<128x128xbf16, #tpu.memory_space<vmem>>, %arg4: memref<128x128xbf16, #tpu.memory_space<vmem>>, %arg5: memref<1x128xf32, #tpu.memory_space<vmem>>, %arg6: memref<128x128xbf16, #tpu.memory_space<vmem>>, %arg7: memref<1x128xf32, #tpu.memory_space<vmem>>, %arg8: memref<8x128xf32, #tpu.memory_space<vmem>>) attributes {dimension_semantics = [#tpu.dimension_semantics<parallel>], iteration_bounds = array<i64: 2>, scalar_prefetch = 0 : i64, scratch_operands = 0 : i64, tpu.core_type = #tpu.core_type<tc>, window_params = [{transform_indices = @transform_0, window_bounds = array<i64: 8, 128>}, {transform_indices = @transform_1, window_bounds = array<i64: 8, 128>}, {pipeline_mode = #tpu.pipeline_mode<synchronous>, transform_indices = @transform_2, window_bounds = array<i64: 128, 128>}, {pipeline_mode = #tpu.pipeline_mode<synchronous>, transform_indices = @transform_3, window_bounds = array<i64: 128, 128>}, {pipeline_mode = #tpu.pipeline_mode<synchronous>, transform_indices = @transform_4, window_bounds = array<i64: 1, 128>}, {pipeline_mode = #tpu.pipeline_mode<synchronous>, transform_indices = @transform_5, window_bounds = array<i64: 128, 128>}, {pipeline_mode = #tpu.pipeline_mode<synchronous>, transform_indices = @transform_6, window_bounds = array<i64: 1, 128>}, {transform_indices = @transform_7, window_bounds = array<i64: 8, 128>}]} {
    %c0 = arith.constant 0 : index
    %c0_0 = arith.constant 0 : index
    %0 = vector.load %arg1[%c0, %c0_0] : memref<8x128xbf16, #tpu.memory_space<vmem>>, vector<8x128xbf16>
    %c0_1 = arith.constant 0 : index
    %c0_2 = arith.constant 0 : index
    %1 = vector.load %arg3[%c0_1, %c0_2] : memref<128x128xbf16, #tpu.memory_space<vmem>>, vector<128x128xbf16>
    %cst = arith.constant dense<0.000000e+00> : vector<8x128xf32>
    %2 = tpu.matmul %0, %1, %cst {dimension_numbers = #tpu.dot_dimension_numbers<[1], [0], [0], [1], [0, 0, 1, 1], [], []>} : vector<8x128xbf16>, vector<128x128xbf16>, vector<8x128xf32> -> vector<8x128xf32>
    %c0_3 = arith.constant 0 : index
    %c0_4 = arith.constant 0 : index
    %3 = vector.load %arg2[%c0_3, %c0_4] : memref<8x128xbf16, #tpu.memory_space<vmem>>, vector<8x128xbf16>
    %c0_5 = arith.constant 0 : index
    %c0_6 = arith.constant 0 : index
    %4 = vector.load %arg4[%c0_5, %c0_6] : memref<128x128xbf16, #tpu.memory_space<vmem>>, vector<128x128xbf16>
    %cst_7 = arith.constant dense<0.000000e+00> : vector<8x128xf32>
    %5 = tpu.matmul %3, %4, %cst_7 {dimension_numbers = #tpu.dot_dimension_numbers<[1], [0], [0], [1], [0, 0, 1, 1], [], []>} : vector<8x128xbf16>, vector<128x128xbf16>, vector<8x128xf32> -> vector<8x128xf32>
    %6 = arith.addf %2, %5 : vector<8x128xf32>
    %c0_8 = arith.constant 0 : index
    %c0_9 = arith.constant 0 : index
    %7 = vector.load %arg5[%c0_8, %c0_9] : memref<1x128xf32, #tpu.memory_space<vmem>>, vector<1x128xf32>
    %8 = vector.broadcast %7 : vector<1x128xf32> to vector<8x128xf32>
    %9 = arith.addf %6, %8 : vector<8x128xf32>
    %cst_10 = arith.constant 0.000000e+00 : f32
    %10 = vector.broadcast %cst_10 : f32 to vector<8x128xf32>
    %11 = arith.maximumf %9, %10 : vector<8x128xf32>
    %12 = arith.truncf %11 : vector<8x128xf32> to vector<8x128xbf16>
    %c0_11 = arith.constant 0 : index
    %c0_12 = arith.constant 0 : index
    %13 = vector.load %arg6[%c0_11, %c0_12] : memref<128x128xbf16, #tpu.memory_space<vmem>>, vector<128x128xbf16>
    %cst_13 = arith.constant dense<0.000000e+00> : vector<8x128xf32>
    %14 = tpu.matmul %12, %13, %cst_13 {dimension_numbers = #tpu.dot_dimension_numbers<[1], [0], [0], [1], [0, 0, 1, 1], [], []>} : vector<8x128xbf16>, vector<128x128xbf16>, vector<8x128xf32> -> vector<8x128xf32>
    %c0_14 = arith.constant 0 : index
    %c0_15 = arith.constant 0 : index
    %15 = vector.load %arg7[%c0_14, %c0_15] : memref<1x128xf32, #tpu.memory_space<vmem>>, vector<1x128xf32>
    %16 = vector.broadcast %15 : vector<1x128xf32> to vector<8x128xf32>
    %17 = arith.addf %14, %16 : vector<8x128xf32>
    %c0_16 = arith.constant 0 : index
    %c0_17 = arith.constant 0 : index
    %18 = vector.load %arg8[%c0_16, %c0_17] : memref<8x128xf32, #tpu.memory_space<vmem>>, vector<8x128xf32>
    tpu.vector_store %arg8[%c0_16, %c0_17], %17 {strides = array<i32>} : memref<8x128xf32, #tpu.memory_space<vmem>>, vector<8x128xf32>,
    return
  }
  func.func @transform_0(%arg0: i32) -> (i32, i32) {
    %c0_i32 = arith.constant 0 : i32
    %c0_i32_0 = arith.constant 0 : i32
    return %arg0, %c0_i32 : i32, i32
  }
  func.func @transform_1(%arg0: i32) -> (i32, i32) {
    %c0_i32 = arith.constant 0 : i32
    %c0_i32_0 = arith.constant 0 : i32
    return %arg0, %c0_i32 : i32, i32
  }
  func.func @transform_2(%arg0: i32) -> (i32, i32) {
    %c0_i32 = arith.constant 0 : i32
    %c0_i32_0 = arith.constant 0 : i32
    %c0_i32_1 = arith.constant 0 : i32
    return %c0_i32, %c0_i32_0 : i32, i32
  }
  func.func @transform_3(%arg0: i32) -> (i32, i32) {
    %c0_i32 = arith.constant 0 : i32
    %c0_i32_0 = arith.constant 0 : i32
    %c0_i32_1 = arith.constant 0 : i32
    return %c0_i32, %c0_i32_0 : i32, i32
  }
  func.func @transform_4(%arg0: i32) -> (i32, i32) {
    %c0_i32 = arith.constant 0 : i32
    %c0_i32_0 = arith.constant 0 : i32
    %c0_i32_1 = arith.constant 0 : i32
    return %c0_i32, %c0_i32_0 : i32, i32
  }
  func.func @transform_5(%arg0: i32) -> (i32, i32) {
    %c0_i32 = arith.constant 0 : i32
    %c0_i32_0 = arith.constant 0 : i32
    %c0_i32_1 = arith.constant 0 : i32
    return %c0_i32, %c0_i32_0 : i32, i32
  }
  func.func @transform_6(%arg0: i32) -> (i32, i32) {
    %c0_i32 = arith.constant 0 : i32
    %c0_i32_0 = arith.constant 0 : i32
    %c0_i32_1 = arith.constant 0 : i32
    return %c0_i32, %c0_i32_0 : i32, i32
  }
  func.func @transform_7(%arg0: i32) -> (i32, i32) {
    %c0_i32 = arith.constant 0 : i32
    %c0_i32_0 = arith.constant 0 : i32
    return %arg0, %c0_i32 : i32, i32
  }
}

</mosaic_0001>

<bundles_post_ra>
// kernel: tpu_custom_call.1
= control target key start
LH: loop header
LB: loop body
LE: loop exit
PB: predicated region body
PF: predicated region fallthrough
CT: control target
= control target key end

     0   :  { %s1466_s0 = inlined_call_operand.hbm [shape: bf16[16,128], index: 0, kind: input, shape index: {}]   ;;  %s1467_s1 = inlined_call_operand.hbm [shape: bf16[16,128], index: 1, kind: input, shape index: {}]   ;;  %s1468_s2 = inlined_call_operand.hbm [shape: bf16[128,128], index: 2, kind: input, shape index: {}]   ;;  %s1469_s3 = inlined_call_operand.hbm [shape: bf16[128,128], index: 3, kind: input, shape index: {}]   ;;  %s1470_s4 = inlined_call_operand.vmem [shape: f32[1,128], index: 4, kind: input, shape index: {}]   ;;  %s1471_s5 = inlined_call_operand.hbm [shape: bf16[128,128], index: 5, kind: input, shape index: {}]   ;;  %s1472_s6 = inlined_call_operand.vmem [shape: f32[1,128], index: 6, kind: input, shape index: {}]   ;;  %s1473_s7 = inlined_call_operand.hbm [shape: f32[16,128], index: 7, kind: output, shape index: {}]  }
   0x1   :  { %1477 = sst [smem:[#allocation20_spill]] %s1468_s2 }
   0x2   :  { %1478 = sst [smem:[#allocation21_spill]] %s1469_s3 }
   0x3   :  { %1479 = sst [smem:[#allocation22_spill]] %s1471_s5 }
   0x4   :  { %12 = vsyncpa [#allocation3], 0 }
   0x5   :  { %14 = vsyncpa [#allocation3 + $0x1], 0 }
   0x6   :  { %15 = vsyncpa [#allocation6], 0 }
   0x7   :  { %17 = vsyncpa [#allocation6 + $0x1], 0 }
   0x8   :  { %18 = vsyncpa [#allocation9], 0 }
   0x9   :  { %19 = vsyncpa [#allocation4], 0 }
   0xa   :  { %21 = vsyncpa [#allocation4 + $0x1], 0  ;;  %s1268_s24 = smov 0   ;;  %s1270_s25 = smov 0  }
   0xb   :  { %s1272_s26 = smov 0   ;;  %s1274_s27 = smov 0  }
   0xc LB: > { %1480 = sst [smem:[#allocation17_spill]] %s1217_s26  ;;  %s1292_s8 = sadd.s32 4294967295, %s1221_s27   ;;  %s1221_s27 = sphi %s1274_s27, %s1494_s27   ;;  %s1217_s26 = sphi %s1272_s26, %s1496_s26   ;;  %s1213_s25 = sphi %s1270_s25, %s1498_s25   ;;  %s1209_s24 = sphi %s1268_s24, %s1497_s24  }
   0xd   : > { %s1481_s2 = sld [smem:[#allocation20_spill]]  ;;  %p767_p0 = scmp.ge.s32.totalorder %s1221_s27, 1 }
   0xe   : > { %p48_p1 = scmp.eq.s32.totalorder %s1292_s8, 0  ;;  %p215_p2 = scmp.lt.s32.totalorder %s1221_s27, 3 }
   0xf   : > { %s1223_s10 = smov [#allocation7]   ;;  %s1483_s3 = sld [smem:[#allocation21_spill]] }
  0x10   : > { %p1297_p3 = pnand %p767_p0, %p215_p2  ;;  %s228_s11 = sshll.u32 %s1223_s10, 4  ;;  %s229_s11 = int_to_ptr.vmem [resolvable:$true] %s228_s11 }
  0x11   : > { %s1485_s5 = sld [smem:[#allocation22_spill]]  ;;  %s1224_s19 = smov [#allocation8]  }
  0x12   : > { %p925_p4 = pneg %p1297_p3  ;;  %s242_s20 = sshll.u32 %s1224_s19, 4  ;;  %s243_s20 = int_to_ptr.vmem [resolvable:$true] %s242_s20 }
  0x13   : > { %s226_s30 = sshll.u32 %s1481_s2, 4  ;;  %s1225_s21 = smov 64   ;;  %s227_s30 = int_to_ptr.hbm [resolvable:$true] %s226_s30 }
  0x14   : > { %p1309_p6 = pnand %p925_p4, %p48_p1  ;;  %s1226_s22 = smov 4  }
  0x15   : > { %s240_s14 = sshll.u32 %s1483_s3, 4  ;;  %s1227_s23 = smov [#allocation10]   ;;  %s241_s14 = int_to_ptr.hbm [resolvable:$true] %s240_s14 }
  0x16   : > { %928 = dma.hbm_to_vmem [thread:$0]  (!%p1309_p6), %s227_s30, 1024, %s229_s11, [#allocation6], %s1225_s21, %s1225_s21, %s1226_s22  }
  0x17   : > { %s257_s18 = sshll.u32 %s1485_s5, 4  ;;  %s259_s28 = sshll.u32 %s1227_s23, 4  ;;  %s258_s18 = int_to_ptr.hbm [resolvable:$true] %s257_s18  ;;  %s260_s28 = int_to_ptr.vmem [resolvable:$true] %s259_s28 }
  0x18   : > { %931 = dma.hbm_to_vmem [thread:$0]  (!%p1309_p6), %s241_s14, 1024, %s243_s20, [#allocation9], %s1225_s21, %s1225_s21, %s1226_s22  }
  0x19   : > { %934 = dma.hbm_to_vmem [thread:$0]  (!%p1309_p6), %s258_s18, 1024, %s260_s28, [#allocation9], %s1225_s21, %s1225_s21, %s1226_s22  }
  0x1a   : > { %s766_s29 = sadd.s32 4294967294, %s1221_s27   ;;  %s1324_s10 = sadd.s32 1, %s1221_s27  }
  0x1b   : > { %1486 = sst [smem:[#allocation18_spill]] %s1324_s10  ;;  %s34_s12 = sadd.s32 1, %s1217_s26 }
  0x1c   : > { %s31_s30 = ssub.s32 %s1221_s27, %s1324_s10  ;;  %p41_p7 = scmp.ne.s32.totalorder %s1217_s26, %s1213_s25 }
  0x1d   : > { %p32_p8 = scmp.eq.s32.totalorder %s31_s30, 0  ;;  %p42_p9 = scmp.eq.s32.totalorder %s1221_s27, 0 }
  0x1e   : > { %p47_p10 = scmp.ne.s32.totalorder %s1213_s25, %s1209_s24  ;;  %p202_p11 = scmp.eq.s32.totalorder %s1292_s8, 1 }
  0x1f   : > { %s1336_s11 = scalar_select %p32_p8, %s1217_s26, %s34_s12  }
  0x20   : > { %p1338_p12 = por %p42_p9, %p41_p7  ;;  %p1344_p13 = por %p48_p1, %p47_p10 }
  0x21   : > { %1487 = sst [smem:[#allocation19_spill]] %s1336_s11  ;;  %p1348_p0 = por %p202_p11, %p41_p7 }
  0x22   : > { %p208_p2 = scmp.eq.s32.totalorder %s766_s29, 1  ;;  %p949_p4 = scmp.lt.s32.totalorder %s1221_s27, 2 }
  0x23   : > { %s276_s16 = sand.u32 1, %s1217_s26   ;;  %s773_s19 = sshll.u32 %s1221_s27, 2 }
  0x24   : > { %p1354_p6 = por %p208_p2, %p47_p10  ;;  %s772_s18 = sshll.u32 %s276_s16, 2 }
  0x25   : > { %s284_s22 = scalar_lea.hbm %s1466_s0, %s773_s19  ;;  %s280_s28 = scalar_lea.vmem [#allocation2], %s772_s18 }
  0x26   : > { %s286_s23 = sshll.u32 %s284_s22, 4  ;;  %s288_s12 = sshll.u32 %s280_s28, 4  ;;  %s287_s23 = int_to_ptr.hbm [resolvable:$true] %s286_s23  ;;  %s289_s12 = int_to_ptr.vmem [resolvable:$true] %s288_s12 }
  0x27   : > { %p1364_p7 = pnand %p949_p4, %p1338_p12  ;;  %s303_s3 = scalar_lea.hbm %s1467_s1, %s773_s19 }
  0x28   : > { %s295_s5 = sand.u32 1, %s1221_s27   ;;  %s277_s11 = scalar_lea.sflag [#allocation3], %s276_s16 }
  0x29   : > { %s1083_s20 = sshra.s32 %s287_s23, 4  ;;  %p1087_p9 = pneg %p1364_p7  ;;  %s1084_s20 = int_to_ptr.hbm [resolvable:$true] %s1083_s20 }
  0x2a   : > { %s1085_s21 = scalar_lea.hbm %s1084_s20, 4  ;;  %s1090_s28 = scalar_lea.hbm %s1466_s0, 8 }
  0x2b   : > { %p1086_p8 = scmp.ne.s32.totalorder %s1084_s20, %s1085_s21  ;;  %p1091_p12 = scmp.lt.s32.totalorder %s1084_s20, %s1466_s0 }
  0x2c   : > { %p1092_p2 = scmp.lt.s32.totalorder %s1090_s28, %s1085_s21 }
  0x2d   : > { %p1088_p10 = pnand %p1087_p9, %p1086_p8 }
  0x2e   : > { %p1093_p4 = por %p1092_p2, %p1091_p12 }
  0x2f   : > { %p1089_p11 = pneg %p1088_p10 }
  0x31   : > { %p1094_p5 = pnand %p1093_p4, %p1089_p11 }
  0x33   : > { %1097 = shalt.err (!%p1094_p5)
}
  0x34   : > { %938 = dma.hbm_to_vmem [thread:$0]  (!%p1364_p7), %s287_s23, 64, %s289_s12, %s277_s11  }
  0x35   : > { %s305_s16 = sshll.u32 %s303_s3, 4  ;;  %s299_s19 = scalar_lea.vmem [#allocation5], %s772_s18  ;;  %s306_s16 = int_to_ptr.hbm [resolvable:$true] %s305_s16 }
  0x36   : > { %s307_s26 = sshll.u32 %s299_s19, 4  ;;  %s296_s10 = scalar_lea.sflag [#allocation6], %s295_s5  ;;  %s308_s26 = int_to_ptr.vmem [resolvable:$true] %s307_s26 }
  0x37   : > { %s1113_s13 = sshra.s32 %s306_s16, 4  ;;  %s1120_s28 = scalar_lea.hbm %s1467_s1, 8  ;;  %s1114_s13 = int_to_ptr.hbm [resolvable:$true] %s1113_s13 }
  0x38   : > { %s1115_s22 = scalar_lea.hbm %s1114_s13, 4  ;;  %p1121_p5 = scmp.lt.s32.totalorder %s1114_s13, %s1467_s1 }
  0x39   : > { %p1116_p8 = scmp.ne.s32.totalorder %s1114_s13, %s1115_s22  ;;  %p1122_p11 = scmp.lt.s32.totalorder %s1120_s28, %s1115_s22 }
  0x3b   : > { %p1118_p10 = pnand %p1116_p8, %p1087_p9  ;;  %p1123_p2 = por %p1122_p11, %p1121_p5 }
  0x3d   : > { %p1119_p12 = pneg %p1118_p10 }
  0x3f   : > { %p1124_p4 = pnand %p1123_p2, %p1119_p12 }
  0x41   : > { %1127 = shalt.err (!%p1124_p4)
}
  0x42   : > { %941 = dma.hbm_to_vmem [thread:$0]  (!%p1364_p7), %s306_s16, 64, %s308_s26, %s296_s10  }
  0x43   : > { %316 = sbr.rel (%p1297_p3) target bundleno = 387 (0x183), region = 48  ;;  %s1399_s3 = sand.u32 (!%p1297_p3), 1, %s1213_s25  }
  0x44   : > { %s777_s5 = sshll.u32 (!%p1297_p3), %s1399_s3, 2  ;;  %s319_s18 = scalar_lea.sflag (!%p1297_p3), [#allocation3], %s1399_s3 }
  0x45   : > { %s1403_s23 = scalar_lea.vmem (!%p1297_p3), [#allocation2], %s777_s5 }
  0x48   : > { %1188 = dma.done.wait (%p1344_p13), %s319_s18, 64  }
  0x49   : > { %1190 = vsyncadd (%p1344_p13), %s319_s18, 4294967232  ;;  %s328_s26 = sand.u32 1, %s1292_s8   ;;  %s1410_s10 = scalar_lea.vmem [#allocation5], %s777_s5 }
  0x4a   : > { %s329_s9 = scalar_lea.sflag [#allocation6], %s328_s26 }
  0x4b   : > { %1192 = dma.done.wait (%p1344_p13), %s329_s9, 64  }
  0x4c   : > { %1194 = vsyncadd (%p1344_p13), %s329_s9, 4294967232 }
  0x4d   : > { %1196 = dma.done.wait (%p48_p1), [#allocation6], 1024  }
  0x4e   : > { %1198 = vsyncadd (%p48_p1), [#allocation6], 4294966272 }
  0x4f   : > { %1200 = dma.done.wait (%p48_p1), [#allocation9], 2048  }
  0x50   : > { %1202 = vsyncadd (%p48_p1), [#allocation9], 4294965248  ;;  %v898_v0 = vld [vmem:[#allocation8 + $0x38] sm:$0xff]  ;;  %v897_v2 = vld [vmem:[#allocation8 + $0x30] sm:$0xff]  ;;  %s880_s29 = sshll.u32 %s1292_s8, 3  ;;  %s782_s30 = sshll.u32 %s1399_s3, 3 }
  0x51   : > { %v890_v1 = vld [vmem:[#allocation7 + $0x38] sm:$0xff]  ;;  %466 = vmatpush.bf16.msra.mxu0 %v898_v0  ;;  %v889_v3 = vld [vmem:[#allocation7 + $0x30] sm:$0xff]  ;;  %v896_v4 = vld [vmem:[#allocation8 + $0x28] sm:$0xff]  ;;  %s640_s13 = scalar_lea.hbm %s1473_s7, %s880_s29  ;;  %s383_s21 = scalar_lea.vmem [#allocation11], %s782_s30 }
  0x52   : > { %527 = vmatpush.bf16.msra.mxu1 %v890_v1  ;;  %v888_v5 = vld [vmem:[#allocation7 + $0x28] sm:$0xff]  ;;  %v906_v6 = vld [vmem:[#allocation10 + $0x38] sm:$0xff]  ;;  %v905_v7 = vld [vmem:[#allocation10 + $0x30] sm:$0xff]  ;;  %s642_s28 = sshll.u32 %s383_s21, 4  ;;  %s644_s2 = sshll.u32 %s640_s13, 4  ;;  %s643_s28 = int_to_ptr.vmem [resolvable:$true] %s642_s28  ;;  %s645_s2 = int_to_ptr.hbm [resolvable:$true] %s644_s2 }
  0x53   : > { %615 = vmatpush.bf16.msra.mxu2 %v906_v6  ;;  %v895_v8 = vld [vmem:[#allocation8 + $0x20] sm:$0xff]  ;;  %v904_v10 = vld [vmem:[#allocation10 + $0x28] sm:$0xff]  ;;  %v894_v11 = vld [vmem:[#allocation8 + $0x18] sm:$0xff]  ;;  %s630_s11 = scalar_lea.sflag [#allocation4], %s1399_s3  ;;  %s1157_s8 = sshra.s32 %s645_s2, 4  ;;  %s1158_s8 = int_to_ptr.hbm [resolvable:$true] %s1157_s8 }
  0x54   : > { %v887_v9 = vld [vmem:[#allocation7 + $0x20] sm:$0xff]  ;;  %v886_v12 = vld [vmem:[#allocation7 + $0x18] sm:$0xff]  ;;  %v893_v14 = vld [vmem:[#allocation8 + $0x10] sm:$0xff]  ;;  %s1159_s5 = scalar_lea.hbm %s1158_s8, 8  ;;  %s1163_s26 = scalar_lea.hbm %s1473_s7, 16 }
  0x55   : > { %467 = vmatpush.bf16.msra.mxu0 %v897_v2  ;;  %v903_v13 = vld [vmem:[#allocation10 + $0x20] sm:$0xff]  ;;  %v885_v15 = vld [vmem:[#allocation7 + $0x10] sm:$0xff]  ;;  %v902_v16 = vld [vmem:[#allocation10 + $0x18] sm:$0xff]  ;;  %p1160_p1 = scmp.ne.s32.totalorder %s1158_s8, %s1159_s5  ;;  %p1164_p7 = scmp.lt.s32.totalorder %s1158_s8, %s1473_s7 }
  0x56   : > { %528 = vmatpush.bf16.msra.mxu1 %v889_v3  ;;  %v892_v17 = vld [vmem:[#allocation8 + $0x8] sm:$0xff]  ;;  %v901_v19 = vld [vmem:[#allocation10 + $0x10] sm:$0xff]  ;;  %v891_v20 = vld [vmem:[#allocation8] sm:$0xff]  ;;  %p1165_p9 = scmp.lt.s32.totalorder %s1163_s26, %s1159_s5 }
  0x57   : > { %616 = vmatpush.bf16.msra.mxu2 %v905_v7  ;;  %v884_v18 = vld [vmem:[#allocation7 + $0x8] sm:$0xff]  ;;  %v883_v21 = vld [vmem:[#allocation7] sm:$0xff]  ;;  %v401_v22 = vld [vmem:[%s1410_s10] sm:$0xf]  ;;  %p1161_p3 = pnand %p1160_p1, %p1348_p0 }
  0x58   : > { %v384_v23 = vld [vmem:[%s1403_s23] sm:$0xf]  ;;  %v900_v24 = vld [vmem:[#allocation10 + $0x8] sm:$0xff]  ;;  %v899_v25 = vld [vmem:[#allocation10] sm:$0xff]  ;;  %p1166_p8 = por %p1165_p9, %p1164_p7 }
  0x59   : > { %468 = vmatpush.bf16.msra.mxu0 %v896_v4  ;;  %v991_v26 = vld [vmem:[%s1470_s4] ss:$0 sm:$0xff]  ;;  %p1162_p13 = pneg %p1161_p3 }
  0x5a   : > { %529 = vmatpush.bf16.msra.mxu1 %v888_v5  ;;  %v992_v35 = vld [vmem:[%s1472_s6] ss:$0 sm:$0xff] }
  0x5b   : > { %617 = vmatpush.bf16.msra.mxu2 %v904_v10  ;;  %p1167_p10 = pnand %p1166_p8, %p1162_p13 }
  0x5d   : > { %469 = vmatpush.bf16.msra.mxu0 %v895_v8 }
  0x5e   : > { %530 = vmatpush.bf16.msra.mxu1 %v887_v9 }
  0x5f   : > { %618 = vmatpush.bf16.msra.mxu2 %v903_v13 }
  0x61   : > { %470 = vmatpush.bf16.msra.mxu0 %v894_v11 }
  0x62   : > { %531 = vmatpush.bf16.msra.mxu1 %v886_v12 }
  0x63   : > { %619 = vmatpush.bf16.msra.mxu2 %v902_v16 }
  0x65   : > { %471 = vmatpush.bf16.msra.mxu0 %v893_v14 }
  0x66   : > { %532 = vmatpush.bf16.msra.mxu1 %v885_v15 }
  0x67   : > { %620 = vmatpush.bf16.msra.mxu2 %v901_v19 }
  0x69   : > { %472 = vmatpush.bf16.msra.mxu0 %v892_v17 }
  0x6a   : > { %533 = vmatpush.bf16.msra.mxu1 %v884_v18 }
  0x6b   : > { %621 = vmatpush.bf16.msra.mxu2 %v900_v24 }
  0x6d   : > { %473 = vmatpush.bf16.msra.mxu0 %v891_v20 }
  0x6e   : > { %534 = vmatpush.bf16.msra.mxu1 %v883_v21 }
  0x6f   : > { %622 = vmatpush.bf16.msra.mxu2 %v899_v25 }
  0x70   : > { %474 = vmatmul.bf16.vlgmr.msra.gmra.mxu0 %v401_v22 }
  0x71   : > { %535 = vmatmul.bf16.vlgmr.msra.gmra.mxu1 %v384_v23 }
  0xed   : > { %v475_v27 = vpop.f32.mrf.mxu0 }
  0xee   : > { %v536_v28 = vpop.f32.mrf.mxu1 }
  0xef   : > { %v537_v29 = vadd.f32 %v536_v28, %v475_v27 }
  0xf1   : > { %v544_v30 = vadd.f32 %v991_v26, %v537_v29 }
  0xf3   : > { %v545_v31 = vmax.f32 %v544_v30, 0.0 }
  0xf5   : > { %v546_v32 = vpack.c.bf16 %v545_v31, %v545_v31  ;;  %v477_v33 = vpop.f32.mrf.mxu0 }
  0xf6   : > { %v538_v34 = vpop.f32.mrf.mxu1 }
  0xf7   : > { %623 = vmatmul.bf16.vlgmr.msra.gmra.mxu2 %v546_v32 }
 0x17a   : > { %v624_v36 = vpop.f32.mrf.mxu2 }
 0x17b   : > { %v625_v37 = vadd.f32 %v992_v35, %v624_v36 }
 0x17d   : > { %628 = vst [vmem:[%s383_s21] sm:$0xff] %v625_v37 }
 0x17e   : > { %1170 = shalt.err (!%p1167_p10)
}
 0x17f   : > { %923 = dma.vmem_to_hbm [thread:$0]  (%p1348_p0), %s643_s28, 128, %s645_s2, %s630_s11  }
 0x182   : > { %v626_v38 = vpop.f32.mrf.mxu2 }
 0x183 PF: > { %s656_s3 = sand.u32 1, %s1209_s24   ;;  %p1493_p12 = scmp.ge.s32.totalorder %s1221_s27, 2 }
 0x184   : > { %s657_s14 = scalar_lea.sflag [#allocation4], %s656_s3 }
 0x185   : > { %p943_p5 = pnand %p1493_p12, %p1354_p6 }
 0x187   : > { %p944_p11 = pneg %p943_p5 }
 0x189   : > { %1204 = dma.done.wait (%p944_p11), %s657_s14, 128  }
 0x18a   : > { %1206 = vsyncadd (%p944_p11), %s657_s14, 4294967168  ;;  %s1494_s27 = sld [smem:[#allocation18_spill]]  ;;  %s1497_s24 = smov %s1213_s25 }
 0x18b   : > { %s1495_s12 = sld [smem:[#allocation17_spill]] }
 0x18c   : > { %s1496_s26 = sld [smem:[#allocation19_spill]] }
 0x190   : > { %p24_p2 = scmp.ge.s32.totalorder %s1494_s27, 4  }
 0x191   : > { %s1498_s25 = smov %s1495_s12 }
 0x192   :  { %26 = sbr.rel (!%p24_p2) target bundleno = 12 (0xc), region = 118 }
 0x197   :  { %663 = vsyncpa [#allocation3], 1 }
 0x198   :  { %665 = vsyncpa [#allocation3 + $0x1], 1 }
 0x199   :  { %666 = vsyncpa [#allocation6], 1 }
 0x19a   :  { %668 = vsyncpa [#allocation6 + $0x1], 1 }
 0x19b   :  { %669 = vsyncpa [#allocation9], 1 }
 0x19c   :  { %670 = vsyncpa [#allocation4], 1 }
 0x19d   :  { %672 = vsyncpa [#allocation4 + $0x1], 1 }

</bundles_post_ra>
